<compile_context>
chip_gen: v6e
topology: v6e:2x2x1
jax: 0.10.0
libtpu: 0.0.40
codegen_flags: <defaults>
</compile_context>

<pallas_src>
import jax
import jax.numpy as jnp
from jax.experimental import pallas as pl
from jax.experimental.pallas import tpu as pltpu

INPUT_DIM = 48
HIDDEN_DIM = 64
OUTPUT_DIM = 128
NUM_HEADS = 4


def gut_microbiome_kernel(x_ref, w1_ref, b1_ref, w2_ref, b2_ref, w3_ref, b3_ref, o_ref):
    # fc1 (BN folded) -> relu.  bf16 operands, f32 accumulation; bias/ReLU in f32
    # (v5e's VPU has no bf16 path, so keep the elementwise math in f32).
    h = jnp.dot(x_ref[...], w1_ref[...], preferred_element_type=jnp.float32) + b1_ref[...]
    h = jnp.maximum(h, 0.0)
    # fc2 (BN folded) -> relu
    h = jnp.dot(h.astype(w2_ref.dtype), w2_ref[...],
                preferred_element_type=jnp.float32) + b2_ref[...]
    h = jnp.maximum(h, 0.0)
    # fc3 + length-1 attention (V-proj + out-proj) folded into one matmul + bias
    out = jnp.dot(h.astype(w3_ref.dtype), w3_ref[...],
                  preferred_element_type=jnp.float32) + b3_ref[...]
    o_ref[...] = out.astype(o_ref.dtype)


def make_params(key):
    ks = jax.random.split(key, 12)
    scale = 0.05
    p = {}
    # fc layers: PyTorch Linear weight is (out, in)
    p["w1"] = scale * jax.random.normal(ks[0], (HIDDEN_DIM, INPUT_DIM), jnp.float32)
    p["b1"] = scale * jax.random.normal(ks[1], (HIDDEN_DIM,), jnp.float32)
    p["w2"] = scale * jax.random.normal(ks[2], (HIDDEN_DIM, HIDDEN_DIM), jnp.float32)
    p["b2"] = scale * jax.random.normal(ks[3], (HIDDEN_DIM,), jnp.float32)
    p["w3"] = scale * jax.random.normal(ks[4], (OUTPUT_DIM, HIDDEN_DIM), jnp.float32)
    p["b3"] = scale * jax.random.normal(ks[5], (OUTPUT_DIM,), jnp.float32)
    # batchnorm (running stats + affine), eval mode
    p["bn1_gamma"] = 1.0 + 0.1 * jax.random.normal(ks[6], (HIDDEN_DIM,), jnp.float32)
    p["bn1_beta"] = 0.1 * jax.random.normal(ks[7], (HIDDEN_DIM,), jnp.float32)
    p["bn1_mean"] = 0.1 * jax.random.normal(ks[8], (HIDDEN_DIM,), jnp.float32)
    p["bn1_var"] = 1.0 + 0.1 * jnp.abs(jax.random.normal(ks[9], (HIDDEN_DIM,), jnp.float32))
    p["bn2_gamma"] = 1.0 + 0.1 * jax.random.normal(ks[10], (HIDDEN_DIM,), jnp.float32)
    p["bn2_beta"] = 0.1 * jax.random.normal(ks[11], (HIDDEN_DIM,), jnp.float32)
    p["bn2_mean"] = jnp.zeros((HIDDEN_DIM,), jnp.float32)
    p["bn2_var"] = jnp.ones((HIDDEN_DIM,), jnp.float32)
    # MultiheadAttention: in_proj (3E, E) split into q/k/v, out_proj (E, E)
    ks2 = jax.random.split(jax.random.fold_in(key, 1), 4)
    p["in_proj_w"] = scale * jax.random.normal(ks2[0], (3 * OUTPUT_DIM, OUTPUT_DIM), jnp.float32)
    p["in_proj_b"] = scale * jax.random.normal(ks2[1], (3 * OUTPUT_DIM,), jnp.float32)
    p["out_proj_w"] = scale * jax.random.normal(ks2[2], (OUTPUT_DIM, OUTPUT_DIM), jnp.float32)
    p["out_proj_b"] = scale * jax.random.normal(ks2[3], (OUTPUT_DIM,), jnp.float32)
    return p


def fold_params(p, compute_dtype=jnp.bfloat16):
    """One-time algebraic folding (call ONCE at model-load time, not per forward)."""
    eps = 1e-5
    # BN (eval) -> per-feature scale/shift folded into the Linear weights/biases.
    s1 = p["bn1_gamma"] / jnp.sqrt(p["bn1_var"] + eps)
    sh1 = p["bn1_beta"] - p["bn1_mean"] * s1
    s2 = p["bn2_gamma"] / jnp.sqrt(p["bn2_var"] + eps)
    sh2 = p["bn2_beta"] - p["bn2_mean"] * s2

    w1f = (p["w1"].T * s1[None, :]).astype(compute_dtype)          # (48, 64)  bf16
    b1f = (p["b1"] * s1 + sh1).astype(jnp.float32)                  # (64,)     f32
    w2f = (p["w2"].T * s2[None, :]).astype(compute_dtype)           # (64, 64)  bf16
    b2f = (p["b2"] * s2 + sh2).astype(jnp.float32)                  # (64,)     f32

    # Length-1 attention: softmax weight == 1, so attn == V projection.
    # Fold fc3 + V-proj + out-proj into one matmul + bias (folding math in f32).
    _, _, wv = jnp.split(p["in_proj_w"], 3, axis=0)                  # (128, 128)
    _, _, bv = jnp.split(p["in_proj_b"], 3, axis=0)                  # (128,)
    wo, bo = p["out_proj_w"], p["out_proj_b"]

    w3f = (p["w3"].T @ wv.T @ wo.T).astype(compute_dtype)            # (64, 128) bf16
    b3f = ((p["b3"] @ wv.T + bv) @ wo.T + bo).astype(jnp.float32)    # (128,)    f32

    row = lambda v: v.reshape(1, -1)
    return (w1f, row(b1f), w2f, row(b2f), w3f, row(b3f))


def _round_up(v, m):
    return ((v + m - 1) // m) * m


def gut_microbiome_forward(x, folded_weights, *, tile_b=2048, out_dtype=None):
    """x: (B, 48) -> (B, 128). `folded_weights` = fold_params(params)."""
    B = x.shape[0]
    assert x.shape[1] == INPUT_DIM
    w1f, b1f, w2f, b2f, w3f, b3f = folded_weights
    out_dtype = out_dtype if out_dtype is not None else x.dtype

    # bf16 activations into the MXU; f32 accumulation inside the kernel.
    x = x.astype(w1f.dtype)

    # Tile selection: large tiles amortize the ~0.35us/step grid overhead, but
    # cap near ceil(B/2) (sublane-aligned) so the 'parallel' batch axis keeps
    # >= 2 steps to shard across v7x's two TensorCores.  No jnp.pad: Pallas
    # masks the boundary block (garbage rows only feed dropped output rows).
    half = _round_up(max(8, -(-B // 2)), 8)
    tb = max(8, min(tile_b, half))
    grid = (pl.cdiv(B, tb),)

    weights = (w1f, b1f, w2f, b2f, w3f, b3f)

    def const_spec(a):
        return pl.BlockSpec(a.shape, lambda i: (0,) * a.ndim)

    flops = 2 * B * (INPUT_DIM * HIDDEN_DIM + HIDDEN_DIM * HIDDEN_DIM
                     + HIDDEN_DIM * OUTPUT_DIM)
    w_bytes = sum(int(w.size) * w.dtype.itemsize for w in weights)
    bytes_accessed = (B * INPUT_DIM * x.dtype.itemsize
                      + B * OUTPUT_DIM * jnp.dtype(out_dtype).itemsize
                      + w_bytes)

    # Per-step VMEM: x tile (lane-padded 48->128) + out tile, double-buffered,
    # plus resident weights.  Only raise the scoped limit for very large tiles
    # (v7x: 64 MiB physical / 32 MiB default scoped VMEM).
    per_step_vmem = (tb * 128 * x.dtype.itemsize * 2
                     + tb * OUTPUT_DIM * jnp.dtype(out_dtype).itemsize * 2
                     + w_bytes)
    vmem_limit = None
    if per_step_vmem > 24 * 1024 * 1024:
        vmem_limit = min(int(per_step_vmem * 2), 100 * 1024 * 1024)

    out = pl.pallas_call(
        gut_microbiome_kernel,
        out_shape=jax.ShapeDtypeStruct((B, OUTPUT_DIM), out_dtype),
        grid_spec=pltpu.PrefetchScalarGridSpec(
            num_scalar_prefetch=0,
            grid=grid,
            in_specs=[pl.BlockSpec((tb, INPUT_DIM), lambda i: (i, 0))]
                     + [const_spec(w) for w in weights],
            out_specs=pl.BlockSpec((tb, OUTPUT_DIM), lambda i: (i, 0)),
        ),
        compiler_params=pltpu.CompilerParams(
            dimension_semantics=("parallel",),
            vmem_limit_bytes=vmem_limit,
        ),
        cost_estimate=pl.CostEstimate(
            flops=flops, bytes_accessed=bytes_accessed, transcendentals=0),
    )(x, *weights)

    return out


def reference_forward(x, p):
    """Pure-JAX f32 reference matching the PyTorch module in eval mode."""
    eps = 1e-5
    h = x @ p["w1"].T + p["b1"]
    h = (h - p["bn1_mean"]) / jnp.sqrt(p["bn1_var"] + eps) * p["bn1_gamma"] + p["bn1_beta"]
    h = jnp.maximum(h, 0.0)
    h = h @ p["w2"].T + p["b2"]
    h = (h - p["bn2_mean"]) / jnp.sqrt(p["bn2_var"] + eps) * p["bn2_gamma"] + p["bn2_beta"]
    h = jnp.maximum(h, 0.0)
    z = h @ p["w3"].T + p["b3"]
    # Full attention math for seq-len 1 (softmax over 1 key == 1.0):
    wq, wk, wv = jnp.split(p["in_proj_w"], 3, axis=0)
    bq, bk, bv = jnp.split(p["in_proj_b"], 3, axis=0)
    v = z @ wv.T + bv
    return v @ p["out_proj_w"].T + p["out_proj_b"]


if __name__ == "__main__":
    key = jax.random.PRNGKey(0)
    pkey, xkey = jax.random.split(key)
    params = make_params(pkey)
    folded = fold_params(params)          # folded once at "load time"

    B = 8
    x = jax.random.normal(xkey, (B, INPUT_DIM), jnp.float32)

    out = gut_microbiome_forward(x, folded)
    out = jax.block_until_ready(out)

    ref = reference_forward(x, params)
    assert out.shape == (B, OUTPUT_DIM)
    # bf16 weights/activations with f32 accumulation -> loosened tolerance.
    assert jnp.allclose(out.astype(jnp.float32), ref, atol=2e-2, rtol=2e-2), \
        "mismatch vs JAX reference"

    print("KERNEL_OK")
</pallas_src>

<mosaic_0001>
module attributes {stable_mosaic.version = 11 : i64} {
  func.func @gut_microbiome_kernel(%arg0: i32, %arg1: memref<8x48xbf16, #tpu.memory_space<vmem>>, %arg2: memref<48x64xbf16, #tpu.memory_space<vmem>>, %arg3: memref<1x64xf32, #tpu.memory_space<vmem>>, %arg4: memref<64x64xbf16, #tpu.memory_space<vmem>>, %arg5: memref<1x64xf32, #tpu.memory_space<vmem>>, %arg6: memref<64x128xbf16, #tpu.memory_space<vmem>>, %arg7: memref<1x128xf32, #tpu.memory_space<vmem>>, %arg8: memref<8x128xf32, #tpu.memory_space<vmem>>) attributes {dimension_semantics = [#tpu.dimension_semantics<parallel>], iteration_bounds = array<i64: 1>, scalar_prefetch = 0 : i64, scratch_operands = 0 : i64, tpu.core_type = #tpu.core_type<tc>, window_params = [{transform_indices = @transform_0, window_bounds = array<i64: 8, 48>}, {pipeline_mode = #tpu.pipeline_mode<synchronous>, transform_indices = @transform_1, window_bounds = array<i64: 48, 64>}, {pipeline_mode = #tpu.pipeline_mode<synchronous>, transform_indices = @transform_2, window_bounds = array<i64: 1, 64>}, {pipeline_mode = #tpu.pipeline_mode<synchronous>, transform_indices = @transform_3, window_bounds = array<i64: 64, 64>}, {pipeline_mode = #tpu.pipeline_mode<synchronous>, transform_indices = @transform_4, window_bounds = array<i64: 1, 64>}, {pipeline_mode = #tpu.pipeline_mode<synchronous>, transform_indices = @transform_5, window_bounds = array<i64: 64, 128>}, {pipeline_mode = #tpu.pipeline_mode<synchronous>, transform_indices = @transform_6, window_bounds = array<i64: 1, 128>}, {transform_indices = @transform_7, window_bounds = array<i64: 8, 128>}]} {
    %c0 = arith.constant 0 : index
    %c0_0 = arith.constant 0 : index
    %0 = vector.load %arg1[%c0, %c0_0] : memref<8x48xbf16, #tpu.memory_space<vmem>>, vector<8x48xbf16>
    %c0_1 = arith.constant 0 : index
    %c0_2 = arith.constant 0 : index
    %1 = vector.load %arg2[%c0_1, %c0_2] : memref<48x64xbf16, #tpu.memory_space<vmem>>, vector<48x64xbf16>
    %cst = arith.constant dense<0.000000e+00> : vector<8x64xf32>
    %2 = tpu.matmul %0, %1, %cst {dimension_numbers = #tpu.dot_dimension_numbers<[1], [0], [0], [1], [0, 0, 1, 1], [], []>} : vector<8x48xbf16>, vector<48x64xbf16>, vector<8x64xf32> -> vector<8x64xf32>
    %c0_3 = arith.constant 0 : index
    %c0_4 = arith.constant 0 : index
    %3 = vector.load %arg3[%c0_3, %c0_4] : memref<1x64xf32, #tpu.memory_space<vmem>>, vector<1x64xf32>
    %4 = vector.broadcast %3 : vector<1x64xf32> to vector<8x64xf32>
    %5 = arith.addf %2, %4 : vector<8x64xf32>
    %cst_5 = arith.constant 0.000000e+00 : f32
    %6 = vector.broadcast %cst_5 : f32 to vector<8x64xf32>
    %7 = arith.maximumf %5, %6 : vector<8x64xf32>
    %8 = arith.truncf %7 : vector<8x64xf32> to vector<8x64xbf16>
    %c0_6 = arith.constant 0 : index
    %c0_7 = arith.constant 0 : index
    %9 = vector.load %arg4[%c0_6, %c0_7] : memref<64x64xbf16, #tpu.memory_space<vmem>>, vector<64x64xbf16>
    %cst_8 = arith.constant dense<0.000000e+00> : vector<8x64xf32>
    %10 = tpu.matmul %8, %9, %cst_8 {dimension_numbers = #tpu.dot_dimension_numbers<[1], [0], [0], [1], [0, 0, 1, 1], [], []>} : vector<8x64xbf16>, vector<64x64xbf16>, vector<8x64xf32> -> vector<8x64xf32>
    %c0_9 = arith.constant 0 : index
    %c0_10 = arith.constant 0 : index
    %11 = vector.load %arg5[%c0_9, %c0_10] : memref<1x64xf32, #tpu.memory_space<vmem>>, vector<1x64xf32>
    %12 = vector.broadcast %11 : vector<1x64xf32> to vector<8x64xf32>
    %13 = arith.addf %10, %12 : vector<8x64xf32>
    %cst_11 = arith.constant 0.000000e+00 : f32
    %14 = vector.broadcast %cst_11 : f32 to vector<8x64xf32>
    %15 = arith.maximumf %13, %14 : vector<8x64xf32>
    %16 = arith.truncf %15 : vector<8x64xf32> to vector<8x64xbf16>
    %c0_12 = arith.constant 0 : index
    %c0_13 = arith.constant 0 : index
    %17 = vector.load %arg6[%c0_12, %c0_13] : memref<64x128xbf16, #tpu.memory_space<vmem>>, vector<64x128xbf16>
    %cst_14 = arith.constant dense<0.000000e+00> : vector<8x128xf32>
    %18 = tpu.matmul %16, %17, %cst_14 {dimension_numbers = #tpu.dot_dimension_numbers<[1], [0], [0], [1], [0, 0, 1, 1], [], []>} : vector<8x64xbf16>, vector<64x128xbf16>, vector<8x128xf32> -> vector<8x128xf32>
    %c0_15 = arith.constant 0 : index
    %c0_16 = arith.constant 0 : index
    %19 = vector.load %arg7[%c0_15, %c0_16] : memref<1x128xf32, #tpu.memory_space<vmem>>, vector<1x128xf32>
    %20 = vector.broadcast %19 : vector<1x128xf32> to vector<8x128xf32>
    %21 = arith.addf %18, %20 : vector<8x128xf32>
    %c0_17 = arith.constant 0 : index
    %c0_18 = arith.constant 0 : index
    %22 = vector.load %arg8[%c0_17, %c0_18] : memref<8x128xf32, #tpu.memory_space<vmem>>, vector<8x128xf32>
    tpu.vector_store %arg8[%c0_17, %c0_18], %21 {strides = array<i32>} : memref<8x128xf32, #tpu.memory_space<vmem>>, vector<8x128xf32>,
    return
  }
  func.func @transform_0(%arg0: i32) -> (i32, i32) {
    %c0_i32 = arith.constant 0 : i32
    %c0_i32_0 = arith.constant 0 : i32
    return %arg0, %c0_i32 : i32, i32
  }
  func.func @transform_1(%arg0: i32) -> (i32, i32) {
    %c0_i32 = arith.constant 0 : i32
    %c0_i32_0 = arith.constant 0 : i32
    %c0_i32_1 = arith.constant 0 : i32
    return %c0_i32, %c0_i32_0 : i32, i32
  }
  func.func @transform_2(%arg0: i32) -> (i32, i32) {
    %c0_i32 = arith.constant 0 : i32
    %c0_i32_0 = arith.constant 0 : i32
    %c0_i32_1 = arith.constant 0 : i32
    return %c0_i32, %c0_i32_0 : i32, i32
  }
  func.func @transform_3(%arg0: i32) -> (i32, i32) {
    %c0_i32 = arith.constant 0 : i32
    %c0_i32_0 = arith.constant 0 : i32
    %c0_i32_1 = arith.constant 0 : i32
    return %c0_i32, %c0_i32_0 : i32, i32
  }
  func.func @transform_4(%arg0: i32) -> (i32, i32) {
    %c0_i32 = arith.constant 0 : i32
    %c0_i32_0 = arith.constant 0 : i32
    %c0_i32_1 = arith.constant 0 : i32
    return %c0_i32, %c0_i32_0 : i32, i32
  }
  func.func @transform_5(%arg0: i32) -> (i32, i32) {
    %c0_i32 = arith.constant 0 : i32
    %c0_i32_0 = arith.constant 0 : i32
    %c0_i32_1 = arith.constant 0 : i32
    return %c0_i32, %c0_i32_0 : i32, i32
  }
  func.func @transform_6(%arg0: i32) -> (i32, i32) {
    %c0_i32 = arith.constant 0 : i32
    %c0_i32_0 = arith.constant 0 : i32
    %c0_i32_1 = arith.constant 0 : i32
    return %c0_i32, %c0_i32_0 : i32, i32
  }
  func.func @transform_7(%arg0: i32) -> (i32, i32) {
    %c0_i32 = arith.constant 0 : i32
    %c0_i32_0 = arith.constant 0 : i32
    return %arg0, %c0_i32 : i32, i32
  }
}

</mosaic_0001>

<bundles_post_ra>
// kernel: tpu_custom_call.1
= control target key start
LH: loop header
LB: loop body
LE: loop exit
PB: predicated region body
PF: predicated region fallthrough
CT: control target
= control target key end

     0   :  { %12 = vsyncpa [#allocation3], 0  ;;  %s624_s0 = inlined_call_operand.hbm [shape: bf16[8,48], index: 0, kind: input, shape index: {}]   ;;  %s625_s1 = inlined_call_operand.hbm [shape: bf16[48,64], index: 1, kind: input, shape index: {}]   ;;  %s626_s2 = inlined_call_operand.vmem [shape: f32[1,64], index: 2, kind: input, shape index: {}]   ;;  %s627_s3 = inlined_call_operand.hbm [shape: bf16[64,64], index: 3, kind: input, shape index: {}]   ;;  %s628_s4 = inlined_call_operand.vmem [shape: f32[1,64], index: 4, kind: input, shape index: {}]   ;;  %s629_s5 = inlined_call_operand.hbm [shape: bf16[64,128], index: 5, kind: input, shape index: {}]   ;;  %s630_s6 = inlined_call_operand.vmem [shape: f32[1,128], index: 6, kind: input, shape index: {}]   ;;  %s631_s7 = inlined_call_operand.hbm [shape: f32[8,128], index: 7, kind: output, shape index: {}]  }
   0x1   :  { %13 = vsyncpa [#allocation6], 0 }
   0x2   :  { %14 = vsyncpa [#allocation9], 0 }
   0x3   :  { %15 = vsyncpa [#allocation4], 0  ;;  %s537_s24 = smov [#allocation5]  }
   0x4   :  { %s31_s25 = sshll.u32 %s537_s24, 4  ;;  %s32_s25 = int_to_ptr.vmem [resolvable:$true] %s31_s25 }
   0x5   :  { %s437_s26 = scalar_lea.vmem %s32_s25, 384  ;;  %p442_p1 = scmp.lt.s32.totalorder %s32_s25, %s32_s25 }
   0x6   :  { %p438_p0 = scmp.ne.s32.totalorder %s32_s25, %s437_s26  ;;  %p443_p2 = scmp.lt.s32.totalorder %s437_s26, %s437_s26 }
   0x8   :  { %p444_p3 = por %p443_p2, %p442_p1 }
   0xa   :  { %p445_p4 = pnand %p444_p3, %p438_p0 }
   0xc   :  { %448 = shalt.err (!%p445_p4)
}
   0xd   :  { %s538_s27 = smov 64   ;;  %s539_s28 = smov 4  }
   0xe   :  { %37 = dma.hbm_to_vmem [thread:$0]  %s625_s1, 384, %s32_s25, [#allocation6], %s538_s27, %s538_s27, %s539_s28  }
   0xf   :  { %s540_s8 = smov [#allocation2]   ;;  %s541_s10 = smov [#allocation7]  }
  0x10   :  { %s22_s9 = sshll.u32 %s540_s8, 4  ;;  %s45_s11 = sshll.u32 %s541_s10, 4  ;;  %s23_s9 = int_to_ptr.vmem [resolvable:$true] %s22_s9  ;;  %s46_s11 = int_to_ptr.vmem [resolvable:$true] %s45_s11 }
  0x11   :  { %s457_s12 = scalar_lea.vmem %s23_s9, 64  ;;  %p462_p6 = scmp.lt.s32.totalorder %s23_s9, %s23_s9 }
  0x12   :  { %p458_p5 = scmp.ne.s32.totalorder %s23_s9, %s457_s12  ;;  %p463_p7 = scmp.lt.s32.totalorder %s457_s12, %s457_s12 }
  0x14   :  { %p464_p8 = por %p463_p7, %p462_p6 }
  0x16   :  { %p465_p9 = pnand %p464_p8, %p458_p5 }
  0x18   :  { %468 = shalt.err (!%p465_p9)
}
  0x19   :  { %25 = dma.hbm_to_vmem [thread:$0]  %s624_s0, 64, %s23_s9, [#allocation3]  }
  0x1a   :  { %s477_s15 = scalar_lea.vmem %s46_s11, 512  ;;  %p482_p11 = scmp.lt.s32.totalorder %s46_s11, %s46_s11 }
  0x1b   :  { %p478_p10 = scmp.ne.s32.totalorder %s46_s11, %s477_s15  ;;  %p483_p12 = scmp.lt.s32.totalorder %s477_s15, %s477_s15 }
  0x1d   :  { %p484_p13 = por %p483_p12, %p482_p11 }
  0x1f   :  { %p485_p0 = pnand %p484_p13, %p478_p10 }
  0x21   :  { %488 = shalt.err (!%p485_p0)
}
  0x22   :  { %51 = dma.hbm_to_vmem [thread:$0]  %s627_s3, 512, %s46_s11, [#allocation6], %s538_s27, %s538_s27, %s539_s28  }
  0x23   :  { %s542_s17 = smov [#allocation8]  }
  0x24   :  { %s59_s18 = sshll.u32 %s542_s17, 4  ;;  %s60_s18 = int_to_ptr.vmem [resolvable:$true] %s59_s18 }
  0x25   :  { %s497_s19 = scalar_lea.vmem %s60_s18, 512  ;;  %p502_p2 = scmp.lt.s32.totalorder %s60_s18, %s60_s18 }
  0x26   :  { %p498_p1 = scmp.ne.s32.totalorder %s60_s18, %s497_s19  ;;  %p503_p3 = scmp.lt.s32.totalorder %s497_s19, %s497_s19 }
  0x28   :  { %p504_p4 = por %p503_p3, %p502_p2 }
  0x2a   :  { %p505_p5 = pnand %p504_p4, %p498_p1 }
  0x2c   :  { %508 = shalt.err (!%p505_p5)
}
  0x2d   :  { %65 = dma.hbm_to_vmem [thread:$0]  %s629_s5, 512, %s60_s18, [#allocation9], %s538_s27, %s538_s27, %s539_s28  }
  0x2e   :  { %529 = dma.done.wait [#allocation3], 64  }
  0x2f   :  { %530 = vsyncadd [#allocation3], 4294967232 }
  0x30   :  { %531 = dma.done.wait [#allocation6], 896  }
  0x31   :  { %532 = vsyncadd [#allocation6], 4294966400 }
  0x32   :  { %533 = dma.done.wait [#allocation9], 512  }
  0x33   :  { %534 = vsyncadd [#allocation9], 4294966784  ;;  %v543_v0 = vmov 0.0   ;;  %vm544_vm0 = vmmov 0   ;;  %v418_v1 = vld [vmem:[#allocation5 + $0x10] sm:$0xff]   ;;  %v419_v2 = vld [vmem:[#allocation5 + $0x8] sm:$0xff]  }
  0x34   :  { %375 = vmatprep.subr.bf16.mxu0 %v543_v0  ;;  %381 = vmatprep.mubr.msk.bf16.mxu0 %vm544_vm0, %v543_v0  ;;  %v421_v3 = vld [vmem:[#allocation7 + $0x18] sm:$0xff]   ;;  %v420_v4 = vld [vmem:[#allocation5] sm:$0xff]   ;;  %v422_v5 = vld [vmem:[#allocation7 + $0x10] sm:$0xff]   ;;  %vm113_vm1 = vcmask 392192   ;;  %vm198_vm2 = vcmask 523264   ;;  %s545_s24 = smov [#allocation10]  }
  0x35   :  { %385 = vmatprep.subr.bf16.mxu1 %v543_v0  ;;  %393 = vmatprep.mubr.msk.bf16.mxu1 %vm544_vm0, %v543_v0  ;;  %v81_v6 = vld [vmem:[#allocation2] sm:$0xf]  ;;  %v423_v7 = vld [vmem:[#allocation7 + $0x8] sm:$0xff]   ;;  %v425_v9 = vld [vmem:[#allocation8 + $0x18] sm:$0xff]   ;;  %s333_s25 = sshll.u32 %s545_s24, 4  ;;  %s334_s25 = int_to_ptr.vmem [resolvable:$true] %s333_s25 }
  0x36   :  { %376 = vmatpush3.bf16.msra.mxu0 %v418_v1  ;;  %386 = vmatpush3.bf16.msra.mxu1 %v421_v3  ;;  %v424_v8 = vld [vmem:[#allocation7] sm:$0xff]   ;;  %v426_v10 = vld [vmem:[#allocation8 + $0x10] sm:$0xff]   ;;  %v427_v19 = vld [vmem:[#allocation8 + $0x8] sm:$0xff]   ;;  %p514_p7 = scmp.lt.s32.totalorder %s334_s25, %s334_s25 }
  0x37   :  { %377 = vmatprep.subr.bf16.mxu0 %v543_v0  ;;  %387 = vmatprep.subr.bf16.mxu1 %v543_v0  ;;  %v344_v11 = vld [vmem:[%s626_s2] ss:$0 sm:$0xff] }
  0x38   :  { %v428_v20 = vld [vmem:[#allocation8] sm:$0xff]  }
  0x39   :  { %v349_v21 = vld [vmem:[%s628_s4] ss:$0 sm:$0xff]  ;;  %s509_s4 = scalar_lea.vmem %s334_s25, 128 }
  0x3a   :  { %378 = vmatpush3.bf16.msra.mxu0 %v419_v2  ;;  %388 = vmatpush3.bf16.msra.mxu1 %v422_v5  ;;  %v355_v29 = vld [vmem:[%s630_s6] ss:$0 sm:$0xff]  ;;  %p510_p6 = scmp.ne.s32.totalorder %s334_s25, %s509_s4  ;;  %p515_p8 = scmp.lt.s32.totalorder %s509_s4, %s509_s4 }
  0x3b   :  { %379 = vmatprep.subr.bf16.mxu0 %v543_v0  ;;  %389 = vmatprep.subr.bf16.mxu1 %v543_v0 }
  0x3c   :  { %p516_p9 = por %p515_p8, %p514_p7 }
  0x3e   :  { %380 = vmatpush3.bf16.msra.mxu0 %v420_v4  ;;  %390 = vmatpush3.bf16.msra.mxu1 %v423_v7  ;;  %p517_p10 = pnand %p516_p9, %p510_p6 }
  0x3f   :  { %397 = vmatprep.subr.bf16.mxu0 %v543_v0  ;;  %391 = vmatprep.subr.bf16.mxu1 %v543_v0 }
  0x41   :  { %382 = vmatmul.mubr.msk.bf16.vlgmr.msra.gmra.mxu0 %vm113_vm1, %v81_v6 }
  0x42   :  { %405 = vmatprep.mubr.msk.bf16.mxu0 %vm544_vm0, %v543_v0  ;;  %392 = vmatpush3.bf16.msra.mxu1 %v424_v8 }
  0x43   :  { %398 = vmatpush3.bf16.msra.mxu0 %v425_v9 }
  0x44   :  { %399 = vmatprep.subr.bf16.mxu0 %v543_v0 }
  0x47   :  { %400 = vmatpush3.bf16.msra.mxu0 %v426_v10 }
  0x48   :  { %401 = vmatprep.subr.bf16.mxu0 %v543_v0 }
  0x4b   :  { %402 = vmatpush3.bf16.msra.mxu0 %v427_v19 }
  0x4c   :  { %403 = vmatprep.subr.bf16.mxu0 %v543_v0 }
  0x4f   :  { %404 = vmatpush3.bf16.msra.mxu0 %v428_v20 }
 0x101   :  { %v151_v12 = vpop.f32.mrf.mxu0 }
 0x102   :  { %v152_v13 = vadd.f32 %v344_v11, %v151_v12 }
 0x103   :  { %v383_v14 = vpop.f32.mrf.mxu0 }
 0x104   :  { %v157_v15 = vmax.f32 %v152_v13, 0.0 }
 0x105   :  { %v154_v16 = vpop.f32.mrf.mxu0 }
 0x106   :  { %v158_v17 = vpack.c.bf16 %v157_v15, %v157_v15 }
 0x107   :  { %v384_v18 = vpop.f32.mrf.mxu0 }
 0x108   :  { %394 = vmatmul.mubr.msk.bf16.vlgmr.msra.gmra.mxu1 %vm198_vm2, %v158_v17 }
 0x1c8   :  { %v236_v22 = vpop.f32.mrf.mxu1 }
 0x1c9   :  { %v237_v23 = vadd.f32 %v349_v21, %v236_v22 }
 0x1ca   :  { %v395_v24 = vpop.f32.mrf.mxu1 }
 0x1cb   :  { %v242_v25 = vmax.f32 %v237_v23, 0.0 }
 0x1cc   :  { %v239_v26 = vpop.f32.mrf.mxu1 }
 0x1cd   :  { %v243_v27 = vpack.c.bf16 %v242_v25, %v242_v25 }
 0x1ce   :  { %v396_v28 = vpop.f32.mrf.mxu1 }
 0x1cf   :  { %406 = vmatmul.mubr.msk.bf16.vlgmr.msra.gmra.mxu0 %vm198_vm2, %v243_v27 }
 0x28f   :  { %v320_v30 = vpop.f32.mrf.mxu0 }
 0x290   :  { %v321_v31 = vadd.f32 %v355_v29, %v320_v30 }
 0x291   :  { %v407_v32 = vpop.f32.mrf.mxu0 }
 0x292   :  { %326 = vst [vmem:[#allocation10] sm:$0xff] %v321_v31 }
 0x293   :  { %v323_v33 = vpop.f32.mrf.mxu0 }
 0x294   :  { %520 = shalt.err (!%p517_p10)
}
 0x295   :  { %336 = dma.vmem_to_hbm [thread:$0]  %s334_s25, 128, %s631_s7, [#allocation4]   ;;  %v408_v34 = vpop.f32.mrf.mxu0 }
 0x296   :  { %535 = dma.done.wait [#allocation4], 128  }
 0x297   :  { %536 = vsyncadd [#allocation4], 4294967168 }
 0x298   :  { %340 = vsyncpa [#allocation3], 1 }
 0x299   :  { %341 = vsyncpa [#allocation6], 1 }
 0x29a   :  { %342 = vsyncpa [#allocation9], 1 }
 0x29b   :  { %343 = vsyncpa [#allocation4], 1 }

</bundles_post_ra>
